<compile_context>
chip_gen: v5e
topology: v5e:2x2
jax: 0.10.0
libtpu: 0.0.40
codegen_flags: <defaults>
</compile_context>

<pallas_src>
import functools

import jax
import jax.numpy as jnp
from jax.experimental import pallas as pl
from jax.experimental.pallas import tpu as pltpu


def _round_up(x, m):
    return ((x + m - 1) // m) * m


def _vmem_capacity_bytes():
    """Per-TensorCore VMEM capacity; conservative (v7x) fallback."""
    try:
        cap = int(pltpu.get_tpu_info().vmem_capacity_bytes)
        if cap > 0:
            return cap
    except Exception:
        pass
    return 64 << 20  # v7x is the smallest current part


def _is_v5e():
    """Best-effort v5e detection (perf gating only; correctness never depends on it)."""
    try:
        kind = jax.devices()[0].device_kind.lower()
    except Exception:
        return False
    return ("v5e" in kind) or ("v5 lite" in kind) or ("v5lite" in kind)


def _vmem_estimate(tb, D, in_itemsize, compute_bf16, upcast):
    """Working-set estimate: pipeline buffers + in-body temporaries."""
    block = tb * D
    pipeline = 3 * 2 * block * in_itemsize        # 3 inputs x double buffer
    out_bufs = 2 * tb * 4                         # (tb, 1) f32 output blocks
    if compute_bf16:
        # d01, d02, sq01, sq02 in bf16 + two (tb, 128) f32 MXU results
        temps = 4 * block * 2 + 2 * tb * 128 * 4
    else:
        casts = (3 * block * 4) if upcast else 0  # full-tile f32 upcasts
        temps = casts + 4 * block * 4 + 2 * tb * 4
    return pipeline + out_bufs + temps


def _pick_batch_tile(B, D, in_itemsize, compute_bf16, upcast, cap):
    small_vmem = cap <= (64 << 20)
    # >=85% of HBM roofline is reached around 1-2 MiB blocks; use ~2 MiB per
    # input block on 64 MiB parts and ~4 MiB on 128 MiB parts.
    target_block_bytes = (2 << 20) if small_vmem else (4 << 20)
    sub_mult = {1: 32, 2: 16}.get(in_itemsize, 8)  # packed-sublane row multiple
    row_bytes = max(D * in_itemsize, 1)

    tb = max(sub_mult, (target_block_bytes // row_bytes) // sub_mult * sub_mult)
    tb = min(tb, 32768)                       # sanity cap on rows per block
    tb = min(tb, _round_up(B, sub_mult))      # never (much) taller than the batch

    budget = cap // 2 if small_vmem else min(cap // 2, 96 << 20)
    while tb > sub_mult and _vmem_estimate(tb, D, in_itemsize, compute_bf16, upcast) > budget:
        tb = max(sub_mult, ((tb // 2) // sub_mult) * sub_mult)
    return tb


def _contrastive_loss_kernel(o0_ref, o1_ref, o2_ref, out_ref, *,
                             margin, upcast_to_f32, use_mxu_reduce):
    o0 = o0_ref[...]
    o1 = o1_ref[...]
    o2 = o2_ref[...]
    if upcast_to_f32:
        # Non-f32 / non-bf16-fast-path inputs: cast in-kernel (hidden under DMA).
        o0 = o0.astype(jnp.float32)
        o1 = o1.astype(jnp.float32)
        o2 = o2.astype(jnp.float32)

    d01 = o0 - o1
    d02 = o0 - o2
    sq01 = d01 * d01
    sq02 = d02 * d02

    if use_mxu_reduce:
        # Row sum-of-squares on the otherwise-idle MXU (bf16 operands, f32 acc):
        # (TB, D) @ (D, 128) ones -> every column is the row sum; keep lane 0.
        dim = sq01.shape[-1]
        ones = jnp.ones((dim, 128), dtype=sq01.dtype)
        s01 = jnp.dot(sq01, ones, preferred_element_type=jnp.float32)[:, :1]
        s02 = jnp.dot(sq02, ones, preferred_element_type=jnp.float32)[:, :1]
    else:
        # Exact f32 path (XLU reduce); kernel is DMA-bound at f32 byte rates.
        s01 = jnp.sum(sq01, axis=-1, keepdims=True)
        s02 = jnp.sum(sq02, axis=-1, keepdims=True)

    n01 = jnp.sqrt(s01)                                   # (TB, 1) f32
    n02 = jnp.sqrt(s02)                                   # (TB, 1) f32
    per_row = n01 + jnp.maximum(margin - n02, 0.0)        # (TB, 1) f32
    out_ref[...] = per_row.astype(out_ref.dtype)


def contrastive_loss(o0, o1, o2, margin=0.2, batch_tile=None):
    """Pallas TPU implementation of ContrastiveLoss.forward (returns scalar f32)."""
    assert o0.shape == o1.shape == o2.shape
    assert o0.ndim == 2
    B, D = o0.shape
    in_dtype = jnp.dtype(o0.dtype)
    in_itemsize = in_dtype.itemsize

    # Dtype routing (gated: f32 inputs must keep exact f32 arithmetic).
    bf16_in = in_dtype == jnp.bfloat16
    compute_bf16 = bf16_in and not _is_v5e()     # v5e has no bf16 VPU: upcast there
    upcast = not (in_dtype == jnp.float32 or compute_bf16)
    use_mxu_reduce = compute_bf16                # MXU-native bf16; f32 keeps XLU reduce

    cap = _vmem_capacity_bytes()
    if batch_tile is None:
        batch_tile = _pick_batch_tile(B, D, in_itemsize, compute_bf16, upcast, cap)
    else:
        batch_tile = max(8, (int(batch_tile) // 8) * 8)

    num_tiles = pl.cdiv(B, batch_tile)
    est = _vmem_estimate(batch_tile, D, in_itemsize, compute_bf16, upcast)
    vmem_limit = int(max(16 << 20, min(cap - (8 << 20), int(1.3 * est) + (4 << 20))))

    kernel = functools.partial(
        _contrastive_loss_kernel, margin=float(margin),
        upcast_to_f32=upcast, use_mxu_reduce=use_mxu_reduce)

    in_spec = pl.BlockSpec((batch_tile, D), lambda i: (i, 0))
    # TODO(synk): if profiling shows exposed input DMA on v5e/v6e (128 MiB VMEM),
    # add pipeline_mode=pl.Buffered(3) to the input specs; keep depth 2 on v7x.

    per_row = pl.pallas_call(
        kernel,
        out_shape=jax.ShapeDtypeStruct((num_tiles * batch_tile, 1), jnp.float32),
        grid_spec=pltpu.PrefetchScalarGridSpec(
            num_scalar_prefetch=0,
            grid=(num_tiles,),
            in_specs=[in_spec, in_spec, in_spec],
            out_specs=pl.BlockSpec((batch_tile, 1), lambda i: (i, 0)),
        ),
        compiler_params=pltpu.CompilerParams(
            dimension_semantics=("parallel",),   # independent tiles -> megacore/2-TC shardable
            vmem_limit_bytes=vmem_limit,
        ),
    )(o0, o1, o2)

    # Rows >= B were computed on unspecified padding data: discard by slicing
    # (never mask-multiply, so NaN/Inf garbage cannot reach the sum).
    return jnp.sum(per_row[:B, 0])


def _reference_loss(o0, o1, o2, margin=0.2):
    o0 = o0.astype(jnp.float32)
    o1 = o1.astype(jnp.float32)
    o2 = o2.astype(jnp.float32)
    n01 = jnp.linalg.norm(o0 - o1, axis=-1)
    n02 = jnp.linalg.norm(o0 - o2, axis=-1)
    return jnp.sum(n01) + jnp.sum(jnp.maximum(margin - n02, 0.0))


if __name__ == "__main__":
    key = jax.random.PRNGKey(0)

    # Case 1: small, sublane-aligned batch of (B, D) embeddings, f32.
    B, D = 8, 128
    k0, k1, k2 = jax.random.split(key, 3)
    a0 = jax.random.normal(k0, (B, D), dtype=jnp.float32) * 0.1
    a1 = jax.random.normal(k1, (B, D), dtype=jnp.float32) * 0.1
    a2 = jax.random.normal(k2, (B, D), dtype=jnp.float32) * 0.1
    loss = contrastive_loss(a0, a1, a2, margin=0.2)
    jax.block_until_ready(loss)
    ref = _reference_loss(a0, a1, a2, margin=0.2)
    assert jnp.allclose(loss, ref, rtol=1e-5, atol=1e-5), (loss, ref)

    # Case 2: ragged batch (B not a multiple of the tile), f32.
    B2 = 12
    k3, k4, k5 = jax.random.split(jax.random.PRNGKey(1), 3)
    b0 = jax.random.normal(k3, (B2, D), dtype=jnp.float32) * 0.1
    b1 = jax.random.normal(k4, (B2, D), dtype=jnp.float32) * 0.1
    b2 = jax.random.normal(k5, (B2, D), dtype=jnp.float32) * 0.1
    loss2 = contrastive_loss(b0, b1, b2, margin=0.2)
    jax.block_until_ready(loss2)
    ref2 = _reference_loss(b0, b1, b2, margin=0.2)
    assert jnp.allclose(loss2, ref2, rtol=1e-5, atol=1e-5), (loss2, ref2)

    # Case 3: bf16 inputs stream natively; bf16 diffs + MXU f32-acc reduce
    # (or f32 fallback on v5e) — looser tolerance.
    c0, c1, c2 = a0.astype(jnp.bfloat16), a1.astype(jnp.bfloat16), a2.astype(jnp.bfloat16)
    loss3 = contrastive_loss(c0, c1, c2, margin=0.2)
    jax.block_until_ready(loss3)
    ref3 = _reference_loss(c0, c1, c2, margin=0.2)
    assert jnp.allclose(loss3, ref3, rtol=2e-2, atol=2e-2), (loss3, ref3)

    print("KERNEL_OK")
</pallas_src>

<mosaic_0001>
module attributes {stable_mosaic.version = 11 : i64} {
  func.func @_contrastive_loss_kernel(%arg0: i32, %arg1: memref<8x128xf32, #tpu.memory_space<vmem>>, %arg2: memref<8x128xf32, #tpu.memory_space<vmem>>, %arg3: memref<8x128xf32, #tpu.memory_space<vmem>>, %arg4: memref<8x1xf32, #tpu.memory_space<vmem>>) attributes {dimension_semantics = [#tpu.dimension_semantics<parallel>], iteration_bounds = array<i64: 1>, scalar_prefetch = 0 : i64, scratch_operands = 0 : i64, tpu.core_type = #tpu.core_type<tc>, window_params = [{transform_indices = @transform_0, window_bounds = array<i64: 8, 128>}, {transform_indices = @transform_1, window_bounds = array<i64: 8, 128>}, {transform_indices = @transform_2, window_bounds = array<i64: 8, 128>}, {transform_indices = @transform_3, window_bounds = array<i64: 8, 1>}]} {
    %c0 = arith.constant 0 : index
    %c0_0 = arith.constant 0 : index
    %0 = vector.load %arg1[%c0, %c0_0] : memref<8x128xf32, #tpu.memory_space<vmem>>, vector<8x128xf32>
    %c0_1 = arith.constant 0 : index
    %c0_2 = arith.constant 0 : index
    %1 = vector.load %arg2[%c0_1, %c0_2] : memref<8x128xf32, #tpu.memory_space<vmem>>, vector<8x128xf32>
    %c0_3 = arith.constant 0 : index
    %c0_4 = arith.constant 0 : index
    %2 = vector.load %arg3[%c0_3, %c0_4] : memref<8x128xf32, #tpu.memory_space<vmem>>, vector<8x128xf32>
    %3 = arith.subf %0, %1 : vector<8x128xf32>
    %4 = arith.subf %0, %2 : vector<8x128xf32>
    %5 = arith.mulf %3, %3 : vector<8x128xf32>
    %6 = arith.mulf %4, %4 : vector<8x128xf32>
    %cst = arith.constant dense<0.000000e+00> : vector<8xf32>
    %7 = vector.multi_reduction <add>, %5, %cst [1] : vector<8x128xf32> to vector<8xf32>
    %8 = vector.shape_cast %7 : vector<8xf32> to vector<8x1xf32>
    %cst_5 = arith.constant dense<0.000000e+00> : vector<8xf32>
    %9 = vector.multi_reduction <add>, %6, %cst_5 [1] : vector<8x128xf32> to vector<8xf32>
    %10 = vector.shape_cast %9 : vector<8xf32> to vector<8x1xf32>
    %11 = math.sqrt %8 : vector<8x1xf32>
    %12 = math.sqrt %10 : vector<8x1xf32>
    %cst_6 = arith.constant 2.000000e-01 : f32
    %13 = vector.broadcast %cst_6 : f32 to vector<8x1xf32>
    %14 = arith.subf %13, %12 : vector<8x1xf32>
    %cst_7 = arith.constant 0.000000e+00 : f32
    %15 = vector.broadcast %cst_7 : f32 to vector<8x1xf32>
    %16 = arith.maximumf %14, %15 : vector<8x1xf32>
    %17 = arith.addf %11, %16 : vector<8x1xf32>
    %c0_8 = arith.constant 0 : index
    %c0_9 = arith.constant 0 : index
    %18 = vector.load %arg4[%c0_8, %c0_9] : memref<8x1xf32, #tpu.memory_space<vmem>>, vector<8x1xf32>
    tpu.vector_store %arg4[%c0_8, %c0_9], %17 {strides = array<i32>} : memref<8x1xf32, #tpu.memory_space<vmem>>, vector<8x1xf32>,
    return
  }
  func.func @transform_0(%arg0: i32) -> (i32, i32) {
    %c0_i32 = arith.constant 0 : i32
    %c0_i32_0 = arith.constant 0 : i32
    return %arg0, %c0_i32 : i32, i32
  }
  func.func @transform_1(%arg0: i32) -> (i32, i32) {
    %c0_i32 = arith.constant 0 : i32
    %c0_i32_0 = arith.constant 0 : i32
    return %arg0, %c0_i32 : i32, i32
  }
  func.func @transform_2(%arg0: i32) -> (i32, i32) {
    %c0_i32 = arith.constant 0 : i32
    %c0_i32_0 = arith.constant 0 : i32
    return %arg0, %c0_i32 : i32, i32
  }
  func.func @transform_3(%arg0: i32) -> (i32, i32) {
    %c0_i32 = arith.constant 0 : i32
    %c0_i32_0 = arith.constant 0 : i32
    return %arg0, %c0_i32 : i32, i32
  }
}

</mosaic_0001>

<bundles_post_ra>
// kernel: tpu_custom_call.1
= control target key start
LH: loop header
LB: loop body
LE: loop exit
PB: predicated region body
PF: predicated region fallthrough
CT: control target
= control target key end

     0   :  { %8 = vsyncpa [#allocation3], 0  ;;  %s219_s0 = inlined_call_operand.hbm [shape: f32[8,128], index: 0, kind: input, shape index: {}]   ;;  %s220_s1 = inlined_call_operand.hbm [shape: f32[8,128], index: 1, kind: input, shape index: {}]   ;;  %s221_s2 = inlined_call_operand.hbm [shape: f32[8,128], index: 2, kind: input, shape index: {}]   ;;  %s222_s3 = inlined_call_operand.vmem [shape: f32[8,1], index: 3, kind: output, shape index: {}]  }
   0x1   :  { %9 = vsyncpa [#allocation5], 0  ;;  %s26_s14 = sshll.u32 %s220_s1, 4  ;;  %s184_s15 = smov [#allocation4]   ;;  %s27_s14 = int_to_ptr.hbm [resolvable:$true] %s26_s14 }
   0x2   :  { %s28_s16 = sshll.u32 %s184_s15, 4  ;;  %s15_s19 = sshll.u32 %s219_s0, 4  ;;  %s29_s16 = int_to_ptr.vmem [resolvable:$true] %s28_s16  ;;  %s16_s19 = int_to_ptr.hbm [resolvable:$true] %s15_s19 }
   0x3   :  { %31 = dma.hbm_to_vmem [thread:$0]  %s27_s14, 128, %s29_s16, [#allocation5]  }
   0x4   :  { %s185_s20 = smov [#allocation2]   ;;  %s37_s24 = sshll.u32 %s221_s2, 4  ;;  %s38_s24 = int_to_ptr.hbm [resolvable:$true] %s37_s24 }
   0x5   :  { %s17_s21 = sshll.u32 %s185_s20, 4  ;;  %s186_s1 = smov [#allocation6]   ;;  %s18_s21 = int_to_ptr.vmem [resolvable:$true] %s17_s21 }
   0x6   :  { %20 = dma.hbm_to_vmem [thread:$0]  %s16_s19, 128, %s18_s21, [#allocation3]  }
   0x7   :  { %s39_s25 = sshll.u32 %s186_s1, 4  ;;  %s40_s25 = int_to_ptr.vmem [resolvable:$true] %s39_s25 }
   0x8   :  { %42 = dma.hbm_to_vmem [thread:$0]  %s38_s24, 128, %s40_s25, [#allocation5]  }
   0x9   :  { %180 = dma.done.wait [#allocation3], 128  }
   0xa   :  { %181 = vsyncadd [#allocation3], 4294967168 }
   0xb   :  { %182 = dma.done.wait [#allocation5], 256  }
   0xc   :  { %183 = vsyncadd [#allocation5], 4294967040  ;;  %v55_v0 = vld [vmem:[#allocation2] sm:$0xff]  ;;  %v57_v1 = vld [vmem:[#allocation6] sm:$0xff]  ;;  %vm93_vm4 = vcmask 7168  }
   0xd   :  { %v59_v2 = vsub.f32 %v55_v0, %v57_v1  ;;  %v56_v3 = vld [vmem:[#allocation4] sm:$0xff] }
   0xe   :  { %v58_v5 = vsub.f32 %v55_v0, %v56_v3 }
   0xf   :  { %v61_v4 = vmul.f32 %v59_v2, %v59_v2 }
  0x10   :  { %v60_v6 = vmul.f32 %v58_v5, %v58_v5 }
  0x11   :  { %64 = vadd.xlane.f32.xlu0 %v61_v4 }
  0x19   :  { %62 = vadd.xlane.f32.xlu0 %v60_v6 }
  0x84   :  { %v65_v7 = vpop.xlane.xlu0 %64 }
  0x85   :  { %104 = vrsqrt.f32 %v65_v7  ;;  %vm85_vm0 = vcmp.eq.f32.partialorder %v65_v7, inf  ;;  %v88_v19 = vand.u32 2147483648, %v65_v7  ;;  %vm87_vm1 = vcmp.eq.f32.partialorder %v65_v7, 0.0 }
  0x8b   :  { %v105_v8 = vpop.eup %104 }
  0x8c   :  { %v79_v9 = vmul.f32 %v105_v8, %v65_v7  ;;  %v63_v10 = vpop.xlane.xlu0 %62 }
  0x8d   :  { %106 = vrsqrt.f32 %v63_v10  ;;  %vm73_vm2 = vcmp.eq.f32.partialorder %v63_v10, inf  ;;  %v76_v27 = vand.u32 2147483648, %v63_v10  ;;  %vm75_vm3 = vcmp.eq.f32.partialorder %v63_v10, 0.0 }
  0x8e   :  { %v80_v11 = vmul.f32 %v105_v8, %v79_v9 }
  0x90   :  { %v81_v12 = vmul.f32 0.5, %v80_v11 }
  0x92   :  { %v82_v13 = vsub.f32 1.5, %v81_v12 }
  0x93   :  { %v107_v14 = vpop.eup %106 }
  0x94   :  { %v83_v15 = vmul.f32 %v105_v8, %v82_v13  ;;  %v67_v16 = vmul.f32 %v107_v14, %v63_v10 }
  0x96   :  { %v84_v17 = vmul.f32 %v83_v15, %v65_v7  ;;  %v68_v18 = vmul.f32 %v107_v14, %v67_v16 }
  0x98   :  { %v86_v20 = vsel %vm85_vm0, %v65_v7, %v84_v17  ;;  %v69_v21 = vmul.f32 0.5, %v68_v18 }
  0x99   :  { %v89_v22 = vsel %vm87_vm1, %v88_v19, %v86_v20 }
  0x9a   :  { %v70_v23 = vsub.f32 1.5, %v69_v21  ;;  %v90_v24 = vsub.f32 0.2, %v89_v22 }
  0x9c   :  { %v71_v25 = vmul.f32 %v107_v14, %v70_v23  ;;  %v91_v28 = vmax.f32 %v90_v24, 0.0 }
  0x9e   :  { %v72_v26 = vmul.f32 %v71_v25, %v63_v10 }
  0xa0   :  { %v74_v29 = vsel %vm73_vm2, %v63_v10, %v72_v26 }
  0xa1   :  { %v77_v30 = vsel %vm75_vm3, %v76_v27, %v74_v29 }
  0xa2   :  { %v92_v31 = vadd.f32 %v91_v28, %v77_v30 }
  0xa4   :  { %94 = vst.msk [vmem:[%s222_s3] sm:$0xff] %vm93_vm4, %v92_v31 }
  0xa5   :  { %99 = vsyncpa [#allocation3], 1 }
  0xa6   :  { %100 = vsyncpa [#allocation5], 1 }

</bundles_post_ra>
